<compile_context>
chip_gen: v7x
topology: tpu7x:2x2x1
jax: 0.10.0
libtpu: 0.0.40
codegen_flags: <defaults>
</compile_context>

<pallas_src>
import functools

import jax
import jax.numpy as jnp
from jax.experimental import pallas as pl
from jax.experimental.pallas import tpu as pltpu

_LANES = 128
_MAX_BLOCK_ROWS = 1024  # (4, 1024, 128) f32 block = 2 MiB; ~10.6 MiB peak VMEM


@functools.lru_cache(maxsize=1)
def _num_core_splits():
    """Use a 2-way 'parallel' core split only on 2-TensorCore (v7x-class) chips."""
    try:
        kind = jax.devices()[0].device_kind.lower()
    except Exception:
        return 1
    return 2 if ("v7" in kind or "7x" in kind) else 1


def _box_losses(pred_ref, target_ref, loss_type):
    """Elementwise IOU/GIOU losses on dense (TR, 128) per-side slabs."""
    pred_left, pred_top, pred_right, pred_bottom = (
        pred_ref[0], pred_ref[1], pred_ref[2], pred_ref[3])
    tgt_left, tgt_top, tgt_right, tgt_bottom = (
        target_ref[0], target_ref[1], target_ref[2], target_ref[3])

    target_area = (tgt_left + tgt_right) * (tgt_top + tgt_bottom)
    pred_area = (pred_left + pred_right) * (pred_top + pred_bottom)

    w_intersect = jnp.minimum(pred_left, tgt_left) + jnp.minimum(pred_right, tgt_right)
    h_intersect = jnp.minimum(pred_bottom, tgt_bottom) + jnp.minimum(pred_top, tgt_top)
    area_intersect = w_intersect * h_intersect
    area_union = target_area + pred_area - area_intersect

    if loss_type == 'iou':
        # -log((ai+1)/(au+1)) == log(au+1) - log(ai+1): two EUP logs, no divide.
        return jnp.log(area_union + 1.0) - jnp.log(area_intersect + 1.0)

    ious = (area_intersect + 1.0) / (area_union + 1.0)
    if loss_type == 'linear_iou':
        return 1.0 - ious
    elif loss_type == 'giou':
        g_w_intersect = (jnp.maximum(pred_left, tgt_left)
                         + jnp.maximum(pred_right, tgt_right))
        g_h_intersect = (jnp.maximum(pred_bottom, tgt_bottom)
                         + jnp.maximum(pred_top, tgt_top))
        ac_union = g_w_intersect * g_h_intersect + 1e-7
        gious = ious - (ac_union - area_union) / ac_union
        return 1.0 - gious
    else:
        raise NotImplementedError(loss_type)


def _iou_loss_kernel_nw(pred_ref, target_ref, out_ref, acc_ref, *, loss_type):
    """Unweighted variant: single output = per-(core,lane) partial loss sum."""
    k = pl.program_id(1)

    @pl.when(k == 0)
    def _():
        acc_ref[...] = jnp.zeros_like(acc_ref)

    acc_ref[...] += _box_losses(pred_ref, target_ref, loss_type)

    @pl.when(k == pl.num_programs(1) - 1)
    def _():
        out_ref[...] = jnp.sum(acc_ref[...], axis=0,
                               keepdims=True).reshape(1, 1, _LANES)


def _iou_loss_kernel_w(pred_ref, target_ref, weight_ref,
                       plain_ref, weighted_ref, wsum_ref,
                       acc_plain, acc_wloss, acc_w, *, loss_type):
    """Weighted variant: plain-sum, weighted-sum and weight-sum lane partials."""
    k = pl.program_id(1)

    @pl.when(k == 0)
    def _():
        acc_plain[...] = jnp.zeros_like(acc_plain)
        acc_wloss[...] = jnp.zeros_like(acc_wloss)
        acc_w[...] = jnp.zeros_like(acc_w)

    losses = _box_losses(pred_ref, target_ref, loss_type)
    w = weight_ref[...]                      # padded weights are exactly zero
    acc_plain[...] += losses
    acc_wloss[...] += losses * w
    acc_w[...] += w

    @pl.when(k == pl.num_programs(1) - 1)
    def _():
        plain_ref[...] = jnp.sum(acc_plain[...], axis=0,
                                 keepdims=True).reshape(1, 1, _LANES)
        weighted_ref[...] = jnp.sum(acc_wloss[...], axis=0,
                                    keepdims=True).reshape(1, 1, _LANES)
        wsum_ref[...] = jnp.sum(acc_w[...], axis=0,
                                keepdims=True).reshape(1, 1, _LANES)


@functools.partial(jax.jit, static_argnames=("loss_type",))
def iou_loss(pred, target, weight=None, loss_type='iou'):
    """Pallas TPU implementation of IOULoss.forward.

    pred, target: (N, 4) arrays [l, t, r, b]; weight: optional (N,). Returns scalar.
    """
    n = pred.shape[0]

    C = _num_core_splits()
    rows_needed = -(-n // _LANES)
    rows_per_core_needed = max(1, -(-rows_needed // C))
    tr = min(_MAX_BLOCK_ROWS, ((rows_per_core_needed + 7) // 8) * 8)
    k_per_core = -(-rows_per_core_needed // tr)
    rows_per_core = k_per_core * tr
    R = C * rows_per_core
    n_pad = R * _LANES                        # total box slots (incl. padding)
    n_padded_boxes = n_pad - n                # static

    def pack_sides(x):  # (N, 4) -> (4, R, 128); fuses into one copy under jit
        xt = jnp.asarray(x, jnp.float32).T
        xt = jnp.pad(xt, ((0, 0), (0, n_pad - n)))
        return xt.reshape(4, R, _LANES)

    pred_p = pack_sides(pred)
    target_p = pack_sides(target)

    grid = (C, k_per_core)
    box_spec = pl.BlockSpec((4, tr, _LANES),
                            lambda c, k: (0, c * k_per_core + k, 0))
    out_spec = pl.BlockSpec((1, 1, _LANES), lambda c, k: (c, 0, 0))
    out_shape = jax.ShapeDtypeStruct((C, 1, _LANES), jnp.float32)
    acc = pltpu.VMEM((tr, _LANES), jnp.float32)
    cparams = pltpu.CompilerParams(
        dimension_semantics=("parallel", "arbitrary"),
        vmem_limit_bytes=32 * 1024 * 1024)

    if weight is None:
        plain_p = pl.pallas_call(
            functools.partial(_iou_loss_kernel_nw, loss_type=loss_type),
            grid=grid,
            in_specs=[box_spec, box_spec],
            out_specs=out_spec,
            out_shape=out_shape,
            scratch_shapes=[acc],
            compiler_params=cparams,
        )(pred_p, target_p)
        plain = jnp.sum(plain_p)
        if loss_type == 'giou' and n_padded_boxes:
            # Each padded (all-zero) box contributes exactly 1.0 to the giou sum.
            plain = plain - jnp.float32(n_padded_boxes)
        return plain

    w_p = jnp.pad(jnp.asarray(weight, jnp.float32),
                  (0, n_pad - n)).reshape(R, _LANES)
    w_spec = pl.BlockSpec((tr, _LANES), lambda c, k: (c * k_per_core + k, 0))
    plain_p, weighted_p, wsum_p = pl.pallas_call(
        functools.partial(_iou_loss_kernel_w, loss_type=loss_type),
        grid=grid,
        in_specs=[box_spec, box_spec, w_spec],
        out_specs=(out_spec, out_spec, out_spec),
        out_shape=(out_shape, out_shape, out_shape),
        scratch_shapes=[acc, acc, acc],
        compiler_params=cparams,
    )(pred_p, target_p, w_p)

    plain = jnp.sum(plain_p)
    if loss_type == 'giou' and n_padded_boxes:
        plain = plain - jnp.float32(n_padded_boxes)
    weighted = jnp.sum(weighted_p)
    wsum = jnp.sum(wsum_p)
    # Data-dependent branch from the PyTorch module:
    # (losses * weight).sum() if weight.sum() > 0 else losses.sum()
    return jnp.where(wsum > 0, weighted, plain)


def _iou_loss_ref(pred, target, weight=None, loss_type='iou'):
    """Pure-JAX reference mirroring the PyTorch module."""
    pred = jnp.asarray(pred, jnp.float32)
    target = jnp.asarray(target, jnp.float32)
    pl_, pt, pr, pb = pred[:, 0], pred[:, 1], pred[:, 2], pred[:, 3]
    tl, tt, tr_, tb = target[:, 0], target[:, 1], target[:, 2], target[:, 3]
    target_area = (tl + tr_) * (tt + tb)
    pred_area = (pl_ + pr) * (pt + pb)
    w_int = jnp.minimum(pl_, tl) + jnp.minimum(pr, tr_)
    g_w_int = jnp.maximum(pl_, tl) + jnp.maximum(pr, tr_)
    h_int = jnp.minimum(pb, tb) + jnp.minimum(pt, tt)
    g_h_int = jnp.maximum(pb, tb) + jnp.maximum(pt, tt)
    ac = g_w_int * g_h_int + 1e-7
    ai = w_int * h_int
    au = target_area + pred_area - ai
    ious = (ai + 1.0) / (au + 1.0)
    gious = ious - (ac - au) / ac
    if loss_type == 'iou':
        losses = -jnp.log(ious)
    elif loss_type == 'linear_iou':
        losses = 1.0 - ious
    elif loss_type == 'giou':
        losses = 1.0 - gious
    else:
        raise NotImplementedError
    if weight is not None:
        weight = jnp.asarray(weight, jnp.float32)
        return jnp.where(weight.sum() > 0, (losses * weight).sum(), losses.sum())
    return losses.sum()


if __name__ == "__main__":
    key = jax.random.PRNGKey(0)
    k1, k2, k3 = jax.random.split(key, 3)
    n = 200  # not a multiple of 128 -> exercises padding handling
    pred = jax.random.uniform(k1, (n, 4), jnp.float32, minval=0.1, maxval=5.0)
    target = jax.random.uniform(k2, (n, 4), jnp.float32, minval=0.1, maxval=5.0)
    weight = jax.random.uniform(k3, (n,), jnp.float32, minval=0.0, maxval=1.0)
    zero_w = jnp.zeros((n,), jnp.float32)  # exercises the weight.sum() <= 0 branch

    ok = True
    for loss_type in ('iou', 'linear_iou', 'giou'):
        for w in (None, weight, zero_w):
            out = jax.block_until_ready(iou_loss(pred, target, w, loss_type=loss_type))
            ref = jax.block_until_ready(_iou_loss_ref(pred, target, w, loss_type))
            if not jnp.allclose(out, ref, rtol=1e-4, atol=1e-4):
                ok = False
                print(f"MISMATCH loss_type={loss_type} "
                      f"weighted={w is not None}: {out} vs {ref}")
    if ok:
        print("KERNEL_OK")
</pallas_src>

<mosaic_0001>
module attributes {stable_mosaic.version = 11 : i64} {
  func.func @_iou_loss_kernel_nw(%arg0: i32, %arg1: i32, %arg2: memref<4x8x128xf32, #tpu.memory_space<vmem>>, %arg3: memref<4x8x128xf32, #tpu.memory_space<vmem>>, %arg4: memref<1x1x128xf32, #tpu.memory_space<vmem>>, %arg5: memref<8x128xf32, #tpu.memory_space<vmem>>) attributes {dimension_semantics = [#tpu.dimension_semantics<parallel>, #tpu.dimension_semantics<arbitrary>], iteration_bounds = array<i64: 1, 1>, scalar_prefetch = 0 : i64, scratch_operands = 1 : i64, tpu.core_type = #tpu.core_type<tc>, window_params = [{transform_indices = @transform_0, window_bounds = array<i64: 4, 8, 128>}, {transform_indices = @transform_1, window_bounds = array<i64: 4, 8, 128>}, {transform_indices = @transform_2, window_bounds = array<i64: 1, 1, 128>}]} {
    %c0_i32 = arith.constant 0 : i32
    %0 = arith.cmpi eq, %arg1, %c0_i32 : i32
    %1 = arith.extui %0 : i1 to i32
    %c0_i32_0 = arith.constant 0 : i32
    %2 = arith.cmpi ne, %1, %c0_i32_0 : i32
    scf.if %2 {
      %cst_28 = arith.constant 0.000000e+00 : f32
      %47 = vector.broadcast %cst_28 : f32 to vector<8x128xf32>
      %c0_29 = arith.constant 0 : index
      %c0_30 = arith.constant 0 : index
      %48 = vector.load %arg5[%c0_29, %c0_30] : memref<8x128xf32, #tpu.memory_space<vmem>>, vector<8x128xf32>
      tpu.vector_store %arg5[%c0_29, %c0_30], %47 {strides = array<i32>} : memref<8x128xf32, #tpu.memory_space<vmem>>, vector<8x128xf32>,
    } else {
    }
    %c0 = arith.constant 0 : index
    %c0_1 = arith.constant 0 : index
    %3 = vector.load %arg5[%c0, %c0_1] : memref<8x128xf32, #tpu.memory_space<vmem>>, vector<8x128xf32>
    %c0_2 = arith.constant 0 : index
    %c0_3 = arith.constant 0 : index
    %c0_4 = arith.constant 0 : index
    %4 = vector.load %arg2[%c0_2, %c0_3, %c0_4] : memref<4x8x128xf32, #tpu.memory_space<vmem>>, vector<1x8x128xf32>
    %5 = vector.shape_cast %4 : vector<1x8x128xf32> to vector<8x128xf32>
    %c1 = arith.constant 1 : index
    %c0_5 = arith.constant 0 : index
    %c0_6 = arith.constant 0 : index
    %6 = vector.load %arg2[%c1, %c0_5, %c0_6] : memref<4x8x128xf32, #tpu.memory_space<vmem>>, vector<1x8x128xf32>
    %7 = vector.shape_cast %6 : vector<1x8x128xf32> to vector<8x128xf32>
    %c2 = arith.constant 2 : index
    %c0_7 = arith.constant 0 : index
    %c0_8 = arith.constant 0 : index
    %8 = vector.load %arg2[%c2, %c0_7, %c0_8] : memref<4x8x128xf32, #tpu.memory_space<vmem>>, vector<1x8x128xf32>
    %9 = vector.shape_cast %8 : vector<1x8x128xf32> to vector<8x128xf32>
    %c3 = arith.constant 3 : index
    %c0_9 = arith.constant 0 : index
    %c0_10 = arith.constant 0 : index
    %10 = vector.load %arg2[%c3, %c0_9, %c0_10] : memref<4x8x128xf32, #tpu.memory_space<vmem>>, vector<1x8x128xf32>
    %11 = vector.shape_cast %10 : vector<1x8x128xf32> to vector<8x128xf32>
    %c0_11 = arith.constant 0 : index
    %c0_12 = arith.constant 0 : index
    %c0_13 = arith.constant 0 : index
    %12 = vector.load %arg3[%c0_11, %c0_12, %c0_13] : memref<4x8x128xf32, #tpu.memory_space<vmem>>, vector<1x8x128xf32>
    %13 = vector.shape_cast %12 : vector<1x8x128xf32> to vector<8x128xf32>
    %c1_14 = arith.constant 1 : index
    %c0_15 = arith.constant 0 : index
    %c0_16 = arith.constant 0 : index
    %14 = vector.load %arg3[%c1_14, %c0_15, %c0_16] : memref<4x8x128xf32, #tpu.memory_space<vmem>>, vector<1x8x128xf32>
    %15 = vector.shape_cast %14 : vector<1x8x128xf32> to vector<8x128xf32>
    %c2_17 = arith.constant 2 : index
    %c0_18 = arith.constant 0 : index
    %c0_19 = arith.constant 0 : index
    %16 = vector.load %arg3[%c2_17, %c0_18, %c0_19] : memref<4x8x128xf32, #tpu.memory_space<vmem>>, vector<1x8x128xf32>
    %17 = vector.shape_cast %16 : vector<1x8x128xf32> to vector<8x128xf32>
    %c3_20 = arith.constant 3 : index
    %c0_21 = arith.constant 0 : index
    %c0_22 = arith.constant 0 : index
    %18 = vector.load %arg3[%c3_20, %c0_21, %c0_22] : memref<4x8x128xf32, #tpu.memory_space<vmem>>, vector<1x8x128xf32>
    %19 = vector.shape_cast %18 : vector<1x8x128xf32> to vector<8x128xf32>
    %20 = arith.addf %13, %17 : vector<8x128xf32>
    %21 = arith.addf %15, %19 : vector<8x128xf32>
    %22 = arith.mulf %20, %21 : vector<8x128xf32>
    %23 = arith.addf %5, %9 : vector<8x128xf32>
    %24 = arith.addf %7, %11 : vector<8x128xf32>
    %25 = arith.mulf %23, %24 : vector<8x128xf32>
    %26 = arith.minimumf %5, %13 : vector<8x128xf32>
    %27 = arith.minimumf %9, %17 : vector<8x128xf32>
    %28 = arith.addf %26, %27 : vector<8x128xf32>
    %29 = arith.minimumf %11, %19 : vector<8x128xf32>
    %30 = arith.minimumf %7, %15 : vector<8x128xf32>
    %31 = arith.addf %29, %30 : vector<8x128xf32>
    %32 = arith.mulf %28, %31 : vector<8x128xf32>
    %33 = arith.addf %22, %25 : vector<8x128xf32>
    %34 = arith.subf %33, %32 : vector<8x128xf32>
    %cst = arith.constant 1.000000e+00 : f32
    %35 = vector.broadcast %cst : f32 to vector<8x128xf32>
    %36 = arith.addf %34, %35 : vector<8x128xf32>
    %37 = math.log %36 : vector<8x128xf32>
    %cst_23 = arith.constant 1.000000e+00 : f32
    %38 = vector.broadcast %cst_23 : f32 to vector<8x128xf32>
    %39 = arith.addf %32, %38 : vector<8x128xf32>
    %40 = math.log %39 : vector<8x128xf32>
    %41 = arith.subf %37, %40 : vector<8x128xf32>
    %42 = arith.addf %3, %41 : vector<8x128xf32>
    %c0_24 = arith.constant 0 : index
    %c0_25 = arith.constant 0 : index
    %43 = vector.load %arg5[%c0_24, %c0_25] : memref<8x128xf32, #tpu.memory_space<vmem>>, vector<8x128xf32>
    tpu.vector_store %arg5[%c0_24, %c0_25], %42 {strides = array<i32>} : memref<8x128xf32, #tpu.memory_space<vmem>>, vector<8x128xf32>,
    %c0_i32_26 = arith.constant 0 : i32
    %44 = arith.cmpi eq, %arg1, %c0_i32_26 : i32
    %45 = arith.extui %44 : i1 to i32
    %c0_i32_27 = arith.constant 0 : i32
    %46 = arith.cmpi ne, %45, %c0_i32_27 : i32
    scf.if %46 {
      %c0_28 = arith.constant 0 : index
      %c0_29 = arith.constant 0 : index
      %47 = vector.load %arg5[%c0_28, %c0_29] : memref<8x128xf32, #tpu.memory_space<vmem>>, vector<8x128xf32>
      %cst_30 = arith.constant dense<0.000000e+00> : vector<128xf32>
      %48 = vector.multi_reduction <add>, %47, %cst_30 [0] : vector<8x128xf32> to vector<128xf32>
      %49 = vector.shape_cast %48 : vector<128xf32> to vector<1x128xf32>
      %50 = vector.shape_cast %49 : vector<1x128xf32> to vector<1x1x128xf32>
      %c0_31 = arith.constant 0 : index
      %c0_32 = arith.constant 0 : index
      %c0_33 = arith.constant 0 : index
      %51 = vector.load %arg4[%c0_31, %c0_32, %c0_33] : memref<1x1x128xf32, #tpu.memory_space<vmem>>, vector<1x1x128xf32>
      tpu.vector_store %arg4[%c0_31, %c0_32, %c0_33], %50 {strides = array<i32>} : memref<1x1x128xf32, #tpu.memory_space<vmem>>, vector<1x1x128xf32>,
    } else {
    }
    return
  }
  func.func @transform_0(%arg0: i32, %arg1: i32) -> (i32, i32, i32) {
    %c1_i32 = arith.constant 1 : i32
    %0 = arith.muli %arg0, %c1_i32 : i32
    %1 = arith.addi %0, %arg1 : i32
    %c0_i32 = arith.constant 0 : i32
    %c0_i32_0 = arith.constant 0 : i32
    %c0_i32_1 = arith.constant 0 : i32
    return %c0_i32, %1, %c0_i32_0 : i32, i32, i32
  }
  func.func @transform_1(%arg0: i32, %arg1: i32) -> (i32, i32, i32) {
    %c1_i32 = arith.constant 1 : i32
    %0 = arith.muli %arg0, %c1_i32 : i32
    %1 = arith.addi %0, %arg1 : i32
    %c0_i32 = arith.constant 0 : i32
    %c0_i32_0 = arith.constant 0 : i32
    %c0_i32_1 = arith.constant 0 : i32
    return %c0_i32, %1, %c0_i32_0 : i32, i32, i32
  }
  func.func @transform_2(%arg0: i32, %arg1: i32) -> (i32, i32, i32) {
    %c0_i32 = arith.constant 0 : i32
    %c0_i32_0 = arith.constant 0 : i32
    %c0_i32_1 = arith.constant 0 : i32
    return %arg0, %c0_i32, %c0_i32_0 : i32, i32, i32
  }
}

</mosaic_0001>

<bundles_post_ra>
// kernel: iou_loss.1
= control target key start
LH: loop header
LB: loop body
LE: loop exit
PB: predicated region body
PF: predicated region fallthrough
CT: control target
= control target key end

     0   :  { %s168_s0 = inlined_call_operand.vmem [shape: f32[4,8,128], index: 0, kind: input, shape index: {}]   ;;  %s169_s1 = inlined_call_operand.vmem [shape: f32[4,8,128], index: 1, kind: input, shape index: {}]   ;;  %s170_s2 = inlined_call_operand.vmem [shape: f32[1,1,128], index: 2, kind: output, shape index: {}]  }
   0x1   :  { %v51_v0 = vld [vmem:[%s168_s0] sm:$0xff]  ;;  %v116_v1 = vld [vmem:[%s168_s0 + $0x8] sm:$0xff]  ;;  %v117_v2 = vld [vmem:[%s168_s0 + $0x10] sm:$0xff] }
   0x2   :  { %v118_v3 = vld [vmem:[%s168_s0 + $0x18] sm:$0xff]  ;;  %v58_v4 = vld [vmem:[%s169_s1] sm:$0xff]  ;;  %v119_v5 = vld [vmem:[%s169_s1 + $0x8] sm:$0xff]  ;;  %v68_v6 = vadd.f32 %v117_v2, %v51_v0 }
   0x3   :  { %v120_v7 = vld [vmem:[%s169_s1 + $0x10] sm:$0xff]  ;;  %v121_v8 = vld [vmem:[%s169_s1 + $0x18] sm:$0xff]  ;;  %v69_v9 = vadd.f32 %v118_v3, %v116_v1  ;;  %v71_v10 = vmin.f32 %v51_v0, %v58_v4  ;;  %v75_v11 = vmin.f32 %v116_v1, %v119_v5 }
   0x4   :  { %v65_v12 = vadd.f32 %v120_v7, %v58_v4  ;;  %v66_v13 = vadd.f32 %v121_v8, %v119_v5  ;;  %v72_v14 = vmin.f32 %v117_v2, %v120_v7  ;;  %v74_v15 = vmin.f32 %v118_v3, %v121_v8 }
   0x5   :  { %v70_v16 = vmul.f32 %v69_v9, %v68_v6 }
   0x6   :  { %v67_v17 = vmul.f32 %v66_v13, %v65_v12  ;;  %v73_v18 = vadd.f32 %v72_v14, %v71_v10  ;;  %v76_v19 = vadd.f32 %v75_v11, %v74_v15 }
   0x8   :  { %v77_v20 = vmul.f32 %v76_v19, %v73_v18  ;;  %v78_v21 = vadd.f32 %v70_v16, %v67_v17 }
   0xa   :  { %v79_v22 = vsub.f32 %v78_v21, %v77_v20  ;;  %v83_v23 = vadd.f32 1.0, %v77_v20 }
   0xc   :  { %v80_v24 = vadd.f32 1.0, %v79_v22  ;;  %122 = vlog2.f32 %v83_v23 }
   0xe   :  { %124 = vlog2.f32 %v80_v24 }
  0x16   :  { %v123_v25 = vpop.eup %122 }
  0x17   :  { %v85_v26 = vmul.f32 0.6931472, %v123_v25 }
  0x18   :  { %v125_v27 = vpop.eup %124 }
  0x19   :  { %v82_v28 = vmul.f32 0.6931472, %v125_v27 }
  0x1b   :  { %v86_v29 = vsub.f32 %v82_v28, %v85_v26 }
  0x1d   :  { %v93_v30 = vrot.slane %v86_v29, 4 }
  0x1f   :  { %v94_v31 = vadd.f32 %v93_v30, %v86_v29 }
  0x21   :  { %v95_v32 = vrot.slane %v94_v31, 2 }
  0x23   :  { %v96_v33 = vadd.f32 %v95_v32, %v94_v31 }
  0x25   :  { %v97_v34 = vrot.slane %v96_v33, 1 }
  0x27   :  { %v98_v35 = vadd.f32 %v97_v34, %v96_v33 }
  0x29   :  { %99 = vst [vmem:[%s170_s2] sm:$0x1] %v98_v35 }

</bundles_post_ra>
